<compile_context>
chip_gen: v7x
topology: tpu7x:2x2x1
jax: 0.10.0
libtpu: 0.0.40
codegen_flags: <defaults>
</compile_context>

<pallas_src>
import math
import functools

import numpy as np
import jax
import jax.numpy as jnp
from jax.experimental import pallas as pl
from jax.experimental.pallas import tpu as pltpu


# ----------------------------------------------------------------------------------
# Kernel body
# ----------------------------------------------------------------------------------
def _seq_attn_kernel(q_ref, k_ref, v_ref, p_ref, o_ref, *, L, TQ, skew_mode):
    G, _, H = q_ref.shape
    WT = TQ + L
    scale = 1.0 / math.sqrt(H)

    # Offset of this query tile inside the (M+L)-long key/value memory.
    t = pl.program_id(1)
    start = pl.multiple_of(t * TQ, TQ)

    # Fold 1/sqrt(head_dim) into q: both score terms are linear in q, so this replaces a
    # (G, TQ, TQ+L) f32 scale with a (G, TQ, H) one.
    q = q_ref[...] * scale                                  # (G, TQ, H), native dtype -> MXU
    k_win = k_ref[:, pl.ds(start, WT), :]                   # (G, WT, H) overlapping window
    v_win = v_ref[:, pl.ds(start, WT), :]

    # (1) content scores on the MXU (batched over the G heads of this grid step).
    s = jnp.einsum("gmh,gch->gmc", q, k_win, preferred_element_type=jnp.float32)

    # (2) relative-position scores.
    if skew_mode is None:
        # Fallback: pre-skewed, pre-scaled scores were computed outside the kernel.
        pos = p_ref[...].astype(jnp.float32)                # (G, TQ, WT)
    else:
        pe = p_ref[...]                                     # (H, WT), zero past column L
        # One flat (G*TQ, H) x (H, WT) matmul: G*TQ MXU rows, no per-head pe copies.
        pos = jnp.dot(q.reshape(G * TQ, H), pe,
                      preferred_element_type=jnp.float32).reshape(G, TQ, WT)
        # Skew: shift row m right by m so pos[., m, j] lands at column m + j.  Wrapped
        # entries originate from the zero-padded pe columns (j >= L) and land strictly
        # out-of-band, so they are harmless.
        if skew_mode == "roll3d":
            # Single strided XLU rotate for the whole (G, TQ, WT) tile.
            pos = pltpu.roll(pos, 0, 2, stride=1, stride_axis=1)
        else:  # "roll2d": per-head rotate, only used if the batched form does not lower.
            pos = jnp.stack(
                [pltpu.roll(pos[g], 0, 1, stride=1, stride_axis=0) for g in range(G)])

    # (3) band mask + numerically stable softmax over the (TQ+L)-wide row.
    row = jax.lax.broadcasted_iota(jnp.int32, (TQ, WT), 0)
    col = jax.lax.broadcasted_iota(jnp.int32, (TQ, WT), 1)
    in_band = (col >= row) & (col < row + L)

    scores = jnp.where(in_band[None, :, :], s + pos, -1e30)
    mx = jnp.max(scores, axis=-1, keepdims=True)
    e = jnp.exp(scores - mx)
    denom = jnp.sum(e, axis=-1, keepdims=True)
    attn = e * pl.reciprocal(denom, approx=True)   # EUP divide (~1e-3 rel, fine for fwd)
    # NOTE: nn.Dropout is identity in eval mode / p = 0 (deterministic kernel).
    # TODO(synk): AdaptiveSpan trim/mask path (args.adapt_span=True) not implemented.

    # (4) output on the MXU.  attn is cast to the value dtype (standard attention practice).
    out = jnp.einsum("gmc,gch->gmh", attn.astype(v_win.dtype), v_win,
                     preferred_element_type=jnp.float32)
    o_ref[...] = out.astype(o_ref.dtype)
    # TODO(synk): with head_dim < 128 loads/stores are lane-masked; if the caller can supply
    # a head-packed (batch, seq, heads*head_dim) layout the whole kernel becomes lane-dense.


# ----------------------------------------------------------------------------------
# One-time cached micro-probe: pick the in-kernel skew implementation.
# Runs once per (TQ, WT) shape at setup time; the main call path has no probes.
# ----------------------------------------------------------------------------------
_SKEW_MODE_CACHE = {}


def _skew_mode(TQ, WT):
    key = (TQ, WT)
    if key in _SKEW_MODE_CACHE:
        return _SKEW_MODE_CACHE[key]

    col = np.arange(WT)[None, :]
    row = np.arange(TQ)[:, None]
    want = col - row            # expected value at (m, c) for c >= m
    sel = col >= row

    mode = None
    # Preferred: one strided roll over the whole (heads, TQ, WT) tile.
    try:
        def probe3(o_ref):
            x = jax.lax.broadcasted_iota(jnp.int32, (2, TQ, WT), 2)
            o_ref[...] = pltpu.roll(x, 0, 2, stride=1, stride_axis=1)

        got = np.asarray(jax.device_get(pl.pallas_call(
            probe3, out_shape=jax.ShapeDtypeStruct((2, TQ, WT), jnp.int32))()))
        if all(np.array_equal(got[g][sel], want[sel]) for g in range(2)):
            mode = "roll3d"
    except Exception:
        mode = None

    if mode is None:
        # Secondary: per-head 2-D strided roll.
        try:
            def probe2(o_ref):
                x = jax.lax.broadcasted_iota(jnp.int32, (TQ, WT), 1)
                o_ref[...] = pltpu.roll(x, 0, 1, stride=1, stride_axis=0)

            got = np.asarray(jax.device_get(pl.pallas_call(
                probe2, out_shape=jax.ShapeDtypeStruct((TQ, WT), jnp.int32))()))
            if np.array_equal(got[sel], want[sel]):
                mode = "roll2d"
        except Exception:
            mode = None

    _SKEW_MODE_CACHE[key] = mode
    return mode


# ----------------------------------------------------------------------------------
# Sizing heuristics (generation-aware VMEM budgets)
# ----------------------------------------------------------------------------------
def _round_up(x, m):
    return -(-x // m) * m


def _tpu_vmem_capacity():
    try:
        cap = int(pltpu.get_tpu_info().vmem_capacity_bytes)
        if cap > 0:
            return cap
    except Exception:
        pass
    return 64 << 20   # conservative default = v7x per-TensorCore VMEM


def _pick_query_tile(M, L):
    if M <= 128:
        return M
    target = 256 if L > 128 else 128
    for t in (target, 128, 64, 32, 16, 8):
        if t <= M and M % t == 0:
            return t
    return M


def _divisors_desc(n):
    return sorted((d for d in range(1, n + 1) if n % d == 0), reverse=True)


def _block_footprint(g, W, TQ, WT, H, itemsize, pos_precomputed):
    """Rough per-step VMEM bytes, counting the 128-lane padding of H(<128) buffers."""
    Hp = _round_up(H, 128)
    WTp = _round_up(WT, 128)
    Wp = _round_up(W, 128)
    io = 2 * g * itemsize * (2 * TQ * Hp + 2 * W * Hp)          # q+out, k+v (double-buffered)
    if pos_precomputed:
        io += 2 * g * TQ * Wp * itemsize                        # pre-skewed score block
    else:
        io += 2 * _round_up(H, 8) * WTp * itemsize              # shared pe tile (tiny)
    scratch = 6 * g * TQ * WTp * 4 + 2 * g * TQ * Hp * 4        # f32 score/exp/attn/out temps
    return io + scratch


def _pick_block_heads(B, W, TQ, WT, H, itemsize, pos_precomputed, budget):
    fits = [g for g in _divisors_desc(B)
            if _block_footprint(g, W, TQ, WT, H, itemsize, pos_precomputed) <= budget]
    if fits:
        # Prefer >= 2 head blocks so the 'parallel' grid axis can feed both v7x TensorCores.
        pref = [g for g in fits if B // g >= 2]
        g = pref[0] if pref else fits[0]
    else:
        g = 1
    return g, _block_footprint(g, W, TQ, WT, H, itemsize, pos_precomputed)


def _vmem_limit_bytes(footprint, cap):
    want = int(footprint * 1.3) + (8 << 20)
    ceiling = max(32 << 20, min(int(cap * 0.72), cap - (12 << 20)))
    return int(min(ceiling, max(32 << 20, want)))


# ----------------------------------------------------------------------------------
# pallas_call builder
# ----------------------------------------------------------------------------------
def _seq_attention_call(query, key, value, p, *, G, TQ, skew_mode, vmem_limit):
    B, M, H = query.shape
    W = key.shape[1]
    L = W - M
    WT = TQ + L
    n_qt = M // TQ
    kernel = functools.partial(_seq_attn_kernel, L=L, TQ=TQ, skew_mode=skew_mode)

    if skew_mode is None:
        p_spec = pl.BlockSpec((G, M, W), lambda b, t: (b, 0, 0))     # pre-skewed scores
    else:
        p_spec = pl.BlockSpec((H, WT), lambda b, t: (0, 0))          # shared padded pe

    return pl.pallas_call(
        kernel,
        out_shape=jax.ShapeDtypeStruct((B, M, H), query.dtype),
        grid=(B // G, n_qt),
        in_specs=[
            pl.BlockSpec((G, TQ, H), lambda b, t: (b, t, 0)),        # query tile
            pl.BlockSpec((G, W, H), lambda b, t: (b, 0, 0)),         # key (reused over t)
            pl.BlockSpec((G, W, H), lambda b, t: (b, 0, 0)),         # value (reused over t)
            p_spec,
        ],
        out_specs=pl.BlockSpec((G, TQ, H), lambda b, t: (b, t, 0)),
        compiler_params=pltpu.CompilerParams(
            dimension_semantics=("parallel", "arbitrary"),
            vmem_limit_bytes=vmem_limit,
        ),
    )(query, key, value, p)


# ----------------------------------------------------------------------------------
# Public wrapper (mirrors SeqAttention.forward with adapt_span=False, dropout=0)
# ----------------------------------------------------------------------------------
def seq_attention_forward(query, key, value, key_pe):
    B, M, H = query.shape
    L = key_pe.shape[-1]
    W = M + L
    assert key.shape == (B, W, H) and value.shape == (B, W, H)

    scale = 1.0 / math.sqrt(H)
    pe2d = key_pe.reshape(H, L).astype(query.dtype)   # keep MXU operands in native dtype

    TQ = _pick_query_tile(M, L)
    mode = _skew_mode(TQ, TQ + L)
    if mode is None:
        TQ = M   # fallback path precomputes full-width skewed scores; no query tiling
    WT = TQ + L

    itemsize = jnp.dtype(query.dtype).itemsize
    cap = _tpu_vmem_capacity()
    G, footprint = _pick_block_heads(B, W, TQ, WT, H, itemsize,
                                     pos_precomputed=(mode is None),
                                     budget=int(cap * 0.34))
    vmem_limit = _vmem_limit_bytes(footprint, cap)

    if mode is not None:
        # Fused path: positional matmul + strided-roll skew inside the kernel.
        p = jnp.pad(pe2d, ((0, 0), (0, TQ)))              # (H, TQ+L), zeros past column L
    else:
        # Fallback: skew the (pre-scaled) positional scores with plain XLA outside the
        # kernel.  Cast to the input dtype to limit the extra HBM traffic.
        pos = jnp.einsum("bmh,hl->bml",
                         query.astype(jnp.float32), pe2d.astype(jnp.float32))
        p = (_skew(pos, 0.0) * scale).astype(query.dtype)  # (B, M, M+L)

    out = _seq_attention_call(query, key, value, p,
                              G=G, TQ=TQ, skew_mode=mode, vmem_limit=vmem_limit)
    return out, 0.0   # adapt_span disabled -> aux_loss == 0, as in the reference


# ---------- pure-JAX reference mirroring the PyTorch skew/unskew path ----------
def _unskew(x):
    B, M, ML = x.shape
    L = ML - M
    x = x.reshape(B, M * ML)
    x = jnp.pad(x, ((0, 0), (0, M)))
    x = x.reshape(B, M, ML + 1)
    return x[:, :, :L]


def _skew(x, pad_value):
    B, M, L = x.shape
    x = jnp.pad(x, ((0, 0), (0, 0), (0, M + 1)), constant_values=pad_value)
    x = x.reshape(B, M * (L + M + 1))
    x = x[:, :-M]
    return x.reshape(B, M, M + L)


def _reference(query, key, value, key_pe):
    H = query.shape[-1]
    hp = jax.lax.Precision.HIGHEST
    attn = jnp.einsum("bmh,bkh->bmk", query, key, precision=hp)
    attn = _unskew(attn)
    attn = attn + jnp.einsum("bmh,hl->bml", query, key_pe.reshape(H, -1), precision=hp)
    attn = attn / math.sqrt(H)
    attn = jax.nn.softmax(attn, axis=-1)
    attn_cont = _skew(attn, 0.0)
    return jnp.einsum("bmk,bkh->bmh", attn_cont, value, precision=hp)


if __name__ == "__main__":
    def run_case(B, M, L, H, rng_key, tol):
        kq, kk, kv, kp = jax.random.split(rng_key, 4)
        query = jax.random.normal(kq, (B, M, H), jnp.float32)
        key = jax.random.normal(kk, (B, M + L, H), jnp.float32)
        value = jax.random.normal(kv, (B, M + L, H), jnp.float32)
        key_pe = 0.1 * jax.random.normal(kp, (1, H, L), jnp.float32)   # pos_emb parameter

        out, aux_loss = seq_attention_forward(query, key, value, key_pe)
        out = jax.block_until_ready(out)

        ref = _reference(query, key, value, key_pe)
        err = float(jnp.max(jnp.abs(out - ref)))
        assert out.shape == (B, M, H), out.shape
        assert aux_loss == 0.0
        assert err < tol, f"max abs err too large: {err} (B={B}, M={M}, L={L}, H={H})"

    root = jax.random.PRNGKey(0)
    k_small, k_big = jax.random.split(root)
    # small shapes: B=2 (batch*heads), block M=8, span L=attn_lim=16, head_dim H=32
    run_case(2, 8, 16, 32, k_small, 2e-2)
    # larger shape exercising query tiling (TQ=128 -> 2 tiles) and multi-head blocking
    run_case(8, 256, 64, 32, k_big, 5e-2)
    print("KERNEL_OK")
</pallas_src>

<mosaic_0001>
module attributes {stable_mosaic.version = 11 : i64} {
  func.func @_seq_attn_kernel(%arg0: i32, %arg1: i32, %arg2: memref<1x8x32xf32, #tpu.memory_space<vmem>>, %arg3: memref<1x24x32xf32, #tpu.memory_space<vmem>>, %arg4: memref<1x24x32xf32, #tpu.memory_space<vmem>>, %arg5: memref<1x8x24xf32, #tpu.memory_space<vmem>>, %arg6: memref<1x8x32xf32, #tpu.memory_space<vmem>>) attributes {dimension_semantics = [#tpu.dimension_semantics<parallel>, #tpu.dimension_semantics<arbitrary>], iteration_bounds = array<i64: 2, 1>, scalar_prefetch = 0 : i64, scratch_operands = 0 : i64, tpu.core_type = #tpu.core_type<tc>, window_params = [{transform_indices = @transform_0, window_bounds = array<i64: 1, 8, 32>}, {transform_indices = @transform_1, window_bounds = array<i64: 1, 24, 32>}, {transform_indices = @transform_2, window_bounds = array<i64: 1, 24, 32>}, {transform_indices = @transform_3, window_bounds = array<i64: 1, 8, 24>}, {transform_indices = @transform_4, window_bounds = array<i64: 1, 8, 32>}]} {
    %c8_i32 = arith.constant 8 : i32
    %0 = arith.muli %arg1, %c8_i32 : i32
    %1 = tpu.assume_multiple %0, 8 : i32
    %c0 = arith.constant 0 : index
    %c0_0 = arith.constant 0 : index
    %c0_1 = arith.constant 0 : index
    %2 = vector.load %arg2[%c0, %c0_0, %c0_1] : memref<1x8x32xf32, #tpu.memory_space<vmem>>, vector<1x8x32xf32>
    %cst = arith.constant 0.176776692 : f32
    %3 = vector.broadcast %cst : f32 to vector<1x8x32xf32>
    %4 = arith.mulf %2, %3 : vector<1x8x32xf32>
    %c0_2 = arith.constant 0 : index
    %5 = arith.index_cast %1 : i32 to index
    %c0_3 = arith.constant 0 : index
    %6 = vector.load %arg3[%c0_2, %5, %c0_3] : memref<1x24x32xf32, #tpu.memory_space<vmem>>, vector<1x24x32xf32>
    %c0_4 = arith.constant 0 : index
    %7 = arith.index_cast %1 : i32 to index
    %c0_5 = arith.constant 0 : index
    %8 = vector.load %arg4[%c0_4, %7, %c0_5] : memref<1x24x32xf32, #tpu.memory_space<vmem>>, vector<1x24x32xf32>
    "tpu.trace_start"() <{level = 10 : i32, message = "gmh,gch->gmc"}> : () -> ()
    %cst_6 = arith.constant dense<0.000000e+00> : vector<1x8x24xf32>
    %9 = tpu.matmul %4, %6, %cst_6 {dimension_numbers = #tpu.dot_dimension_numbers<[2], [2], [1], [1], [0, 0, 0, 1, 1, 1], [0], [0]>} : vector<1x8x32xf32>, vector<1x24x32xf32>, vector<1x8x24xf32> -> vector<1x8x24xf32>
    "tpu.trace_stop"() : () -> ()
    %c0_7 = arith.constant 0 : index
    %c0_8 = arith.constant 0 : index
    %c0_9 = arith.constant 0 : index
    %10 = vector.load %arg5[%c0_7, %c0_8, %c0_9] : memref<1x8x24xf32, #tpu.memory_space<vmem>>, vector<1x8x24xf32>
    %11 = tpu.iota {dimensions = array<i32: 0>} : vector<8x24xi32>
    %12 = tpu.iota {dimensions = array<i32: 1>} : vector<8x24xi32>
    %13 = arith.cmpi sge, %12, %11 : vector<8x24xi32>
    %c16_i32 = arith.constant 16 : i32
    %14 = vector.broadcast %c16_i32 : i32 to vector<8x24xi32>
    %15 = arith.addi %11, %14 : vector<8x24xi32>
    %16 = arith.cmpi slt, %12, %15 : vector<8x24xi32>
    %17 = arith.andi %13, %16 : vector<8x24xi1>
    %18 = vector.shape_cast %17 : vector<8x24xi1> to vector<1x8x24xi1>
    %19 = arith.addf %9, %10 : vector<1x8x24xf32>
    %cst_10 = arith.constant -1.000000e+30 : f32
    %20 = vector.broadcast %cst_10 : f32 to vector<1x8x24xf32>
    %21 = arith.select %18, %19, %20 : vector<1x8x24xi1>, vector<1x8x24xf32>
    %cst_11 = arith.constant dense<0xFF800000> : vector<1x8xf32>
    %22 = vector.multi_reduction <maximumf>, %21, %cst_11 [2] : vector<1x8x24xf32> to vector<1x8xf32>
    %23 = vector.shape_cast %22 : vector<1x8xf32> to vector<1x8x1xf32>
    %24 = vector.broadcast %23 : vector<1x8x1xf32> to vector<1x8x24xf32>
    %25 = arith.subf %21, %24 : vector<1x8x24xf32>
    %26 = math.exp %25 : vector<1x8x24xf32>
    %cst_12 = arith.constant dense<0.000000e+00> : vector<1x8xf32>
    %27 = vector.multi_reduction <add>, %26, %cst_12 [2] : vector<1x8x24xf32> to vector<1x8xf32>
    %28 = vector.shape_cast %27 : vector<1x8xf32> to vector<1x8x1xf32>
    %29 = tpu.reciprocal %28 {approx = true} : vector<1x8x1xf32> -> vector<1x8x1xf32>
    %30 = vector.broadcast %29 : vector<1x8x1xf32> to vector<1x8x24xf32>
    %31 = arith.mulf %26, %30 : vector<1x8x24xf32>
    "tpu.trace_start"() <{level = 10 : i32, message = "gmc,gch->gmh"}> : () -> ()
    %cst_13 = arith.constant dense<0.000000e+00> : vector<1x8x32xf32>
    %32 = tpu.matmul %31, %8, %cst_13 {dimension_numbers = #tpu.dot_dimension_numbers<[2], [1], [1], [2], [0, 0, 0, 1, 1, 2], [0], [0]>} : vector<1x8x24xf32>, vector<1x24x32xf32>, vector<1x8x32xf32> -> vector<1x8x32xf32>
    "tpu.trace_stop"() : () -> ()
    %c0_14 = arith.constant 0 : index
    %c0_15 = arith.constant 0 : index
    %c0_16 = arith.constant 0 : index
    %33 = vector.load %arg6[%c0_14, %c0_15, %c0_16] : memref<1x8x32xf32, #tpu.memory_space<vmem>>, vector<1x8x32xf32>
    tpu.vector_store %arg6[%c0_14, %c0_15, %c0_16], %32 {strides = array<i32>} : memref<1x8x32xf32, #tpu.memory_space<vmem>>, vector<1x8x32xf32>,
    return
  }
  func.func @transform_0(%arg0: i32, %arg1: i32) -> (i32, i32, i32) {
    %c0_i32 = arith.constant 0 : i32
    %c0_i32_0 = arith.constant 0 : i32
    return %arg0, %arg1, %c0_i32 : i32, i32, i32
  }
  func.func @transform_1(%arg0: i32, %arg1: i32) -> (i32, i32, i32) {
    %c0_i32 = arith.constant 0 : i32
    %c0_i32_0 = arith.constant 0 : i32
    %c0_i32_1 = arith.constant 0 : i32
    return %arg0, %c0_i32, %c0_i32_0 : i32, i32, i32
  }
  func.func @transform_2(%arg0: i32, %arg1: i32) -> (i32, i32, i32) {
    %c0_i32 = arith.constant 0 : i32
    %c0_i32_0 = arith.constant 0 : i32
    %c0_i32_1 = arith.constant 0 : i32
    return %arg0, %c0_i32, %c0_i32_0 : i32, i32, i32
  }
  func.func @transform_3(%arg0: i32, %arg1: i32) -> (i32, i32, i32) {
    %c0_i32 = arith.constant 0 : i32
    %c0_i32_0 = arith.constant 0 : i32
    %c0_i32_1 = arith.constant 0 : i32
    return %arg0, %c0_i32, %c0_i32_0 : i32, i32, i32
  }
  func.func @transform_4(%arg0: i32, %arg1: i32) -> (i32, i32, i32) {
    %c0_i32 = arith.constant 0 : i32
    %c0_i32_0 = arith.constant 0 : i32
    return %arg0, %arg1, %c0_i32 : i32, i32, i32
  }
}

</mosaic_0001>

<bundles_post_ra>
// kernel: tpu_custom_call.1
= control target key start
LH: loop header
LB: loop body
LE: loop exit
PB: predicated region body
PF: predicated region fallthrough
CT: control target
= control target key end

     0   :  { %s1414_s0 = inlined_call_operand.hbm [shape: f32[2,8,32], index: 0, kind: input, shape index: {}]   ;;  %s1415_s1 = inlined_call_operand.hbm [shape: f32[2,24,32], index: 1, kind: input, shape index: {}]   ;;  %s1416_s2 = inlined_call_operand.hbm [shape: f32[2,24,32], index: 2, kind: input, shape index: {}]   ;;  %s1417_s3 = inlined_call_operand.hbm [shape: f32[2,8,24], index: 3, kind: input, shape index: {}]   ;;  %s1418_s4 = inlined_call_operand.hbm [shape: f32[2,8,32], index: 4, kind: output, shape index: {}]  }
   0x1   :  { %1430 = sst [smem:[#allocation18_spill]] %s1415_s1 }
   0x2   :  { %9 = vsyncpa [#allocation3], 0 }
   0x3   :  { %11 = vsyncpa [#allocation3 + $0x1], 0 }
   0x4   :  { %12 = vsyncpa [#allocation6], 0 }
   0x5   :  { %14 = vsyncpa [#allocation6 + $0x1], 0 }
   0x6   :  { %15 = vsyncpa [#allocation9], 0 }
   0x7   :  { %17 = vsyncpa [#allocation9 + $0x1], 0 }
   0x8   :  { %18 = vsyncpa [#allocation4], 0 }
   0x9   :  { %20 = vsyncpa [#allocation4 + $0x1], 0  ;;  %s1093_s15 = smov 0   ;;  %s1095_s16 = smov 0  }
   0xa   :  { %s1097_s17 = smov 0   ;;  %s1099_s18 = smov 0  }
   0xb   :  { %s1101_s19 = smov 0   ;;  %s1103_s20 = smov 0  }
   0xc LB: > { %1431 = sst [smem:[#allocation15_spill]] %s1044_s17  ;;  %s1124_s21 = sadd.s32 4294967295, %s1056_s20   ;;  %s1056_s20 = sphi %s1103_s20, %s26_s20   ;;  %s1052_s19 = sphi %s1101_s19, %s1460_s19   ;;  %s1048_s18 = sphi %s1099_s18, %s1459_s18   ;;  %s1044_s17 = sphi %s1097_s17, %s1455_s17   ;;  %s1040_s16 = sphi %s1095_s16, %s1458_s16   ;;  %s1036_s15 = sphi %s1093_s15, %s1457_s15  }
   0xd   : > { %s700_s22 = sadd.s32 4294967294, %s1056_s20   ;;  %s38_s23 = sadd.s32 1, %s1052_s19 }
   0xe   : > { %s47_s24 = sadd.s32 1, %s1044_s17  ;;  %p40_p0 = scmp.ge.s32.totalorder %s38_s23, 2 }
   0xf   : > { %p54_p1 = scmp.ne.s32.totalorder %s1044_s17, %s1040_s16  ;;  %p55_p2 = scmp.eq.s32.totalorder %s1056_s20, 0 }
  0x10   : > { %p60_p3 = scmp.ne.s32.totalorder %s1040_s16, %s1036_s15  ;;  %s1462_s23 = smov (%p40_p0, %s38_s23), 0 }
  0x11   : > { %1432 = sst [smem:[#allocation16_spill]] %s1462_s23  ;;  %p1136_p4 = por %p55_p2, %p54_p1 }
  0x12   : > { %p61_p5 = scmp.eq.s32.totalorder %s1124_s21, 0  ;;  %s42_s26 = ssub.s32 %s1052_s19, %s1462_s23 }
  0x13   : > { %p164_p6 = scmp.eq.s32.totalorder %s1124_s21, 1  ;;  %p45_p7 = scmp.eq.s32.totalorder %s42_s26, 0 }
  0x14   : > { %p1144_p8 = por %p61_p5, %p60_p3  ;;  %p170_p10 = scmp.eq.s32.totalorder %s700_s22, 1 }
  0x15   : > { %p1148_p9 = por %p164_p6, %p54_p1  ;;  %p787_p13 = scmp.lt.s32.totalorder %s1056_s20, 2 }
  0x16   : > { %s1434_s27 = scalar_select %p1144_p8, 1, 0 }
  0x17   : > { %s1435_s28 = scalar_select %p1148_p9, 1, 0 }
  0x18   : > { %s1153_s29 = scalar_select %p45_p7, %s1044_s17, %s47_s24  }
  0x19   : > { %p1155_p11 = por %p170_p10, %p60_p3  ;;  %s1162_s5 = sand.u32 1, %s1044_s17  }
  0x1a   : > { %1436 = sst [smem:[#allocation17_spill]] %s1153_s29  ;;  %s209_s6 = sand.u32 1, %s1056_s20  }
  0x1b   : > { %s1437_s30 = scalar_select %p1155_p11, 1, 0 }
  0x1c   : > { %s1419_s7 = smul.u32 24, %s1162_s5  ;;  %p1168_p0 = pnand %p787_p13, %p1136_p4 }
  0x1d   : > { %s1422_s9 = smul.u32 384, %s1052_s19  ;;  %s1439_s1 = sld [smem:[#allocation18_spill]] }
  0x1e   : > { %s1438_s8 = scalar_select %p1168_p0, 1, 0 }
  0x1f   : > { %s213_s10 = scalar_lea.vmem [#allocation5], %s1419_s7  ;;  %s1184_s22 = scalar_lea.sflag [#allocation6], %s209_s6 }
  0x20   : > { %s220_s11 = sshll.u32 %s213_s10, 4  ;;  %p1190_p2 = pneg %p1168_p0  ;;  %s1182_s11 = int_to_ptr.vmem [resolvable:$true] %s220_s11 }
  0x23   : > { %s1180_s14 = scalar_lea.hbm %s1439_s1, %s1422_s9  ;;  %s851_s12 = scalar_lea.hbm %s1439_s1, 768 }
  0x24   : > { %s846_s24 = scalar_lea.hbm %s1180_s14, 384  ;;  %p852_p5 = scmp.lt.u32.totalorder %s1180_s14, %s1439_s1 }
  0x25   : > { %p847_p1 = scmp.ne.s32.totalorder %s1180_s14, %s846_s24  ;;  %p853_p6 = scmp.lt.u32.totalorder %s851_s12, %s846_s24 }
  0x26   : > { %p855_p10 = scmp.lt.u32.totalorder %s846_s24, %s1180_s14 }
  0x27   : > { %p849_p3 = pnand %p1190_p2, %p847_p1  ;;  %p854_p7 = por %p853_p6, %p852_p5 }
  0x29   : > { %p850_p4 = pneg %p849_p3  ;;  %p856_p13 = por %p855_p10, %p854_p7 }
  0x2b   : > { %p857_p12 = pnand %p856_p13, %p850_p4 }
  0x2d   : > { %860 = shalt.err (!%p857_p12)
}
  0x2e   : > { %s861_s6 = scalar_lea.vmem %s1182_s11, 384  ;;  %s1058_s26 = smov [#allocation5]  }
  0x2f   : > { %p862_p1 = scmp.ne.s32.totalorder %s1182_s11, %s861_s6  ;;  %s866_s10 = sshll.u32 %s1058_s26, 4  ;;  %s867_s10 = int_to_ptr.vmem [resolvable:$false] %s866_s10 }
  0x30   : > { %s868_s7 = scalar_lea.vmem %s867_s10, 768  ;;  %p869_p9 = scmp.lt.s32.totalorder %s1182_s11, %s867_s10 }
  0x31   : > { %p864_p3 = pnand %p862_p1, %p1190_p2  ;;  %p870_p8 = scmp.lt.s32.totalorder %s868_s7, %s861_s6 }
  0x33   : > { %p865_p11 = pneg %p864_p3  ;;  %p871_p5 = por %p870_p8, %p869_p9 }
  0x35   : > { %p872_p6 = pnand %p871_p5, %p865_p11 }
  0x37   : > { %875 = shalt.err (!%p872_p6)
}
  0x38   : > { %s1423_s24 = smov 128   ;;  %s1424_s12 = smov 8  }
  0x39   : > { %776 = dma.hbm_to_vmem [thread:$0]  (!%p1168_p0), %s1180_s14, 384, %s1182_s11, %s1184_s22, %s1423_s24, %s1423_s24, %s1424_s12  }
  0x3a   : > { %p709_p8 = scmp.ge.s32.totalorder %s1056_s20, 1  ;;  %p267_p9 = scmp.lt.s32.totalorder %s1056_s20, 3 }
  0x3b   : > { %s1428_s6 = sshll.u32 %s1162_s5, 3  ;;  %s1427_s26 = sshll.u32 %s1052_s19, 7 }
  0x3c   : > { %p1219_p11 = pnand %p709_p8, %p267_p9  ;;  %s1230_s9 = scalar_lea.hbm %s1414_s0, %s1427_s26 }
  0x3d   : > { %s194_s11 = scalar_lea.vmem [#allocation2], %s1428_s6  ;;  %s1442_s24 = smul.u32 384, %s1052_s19 }
  0x3e   : > { %s1441_s13 = scalar_select %p1219_p11, 1, 0 }
  0x3f   : > { %s202_s14 = sshll.u32 %s194_s11, 4  ;;  %s1241_s23 = scalar_lea.hbm %s1416_s2, %s1442_s24  ;;  %s1234_s14 = int_to_ptr.vmem [resolvable:$true] %s202_s14 }
  0x40   : > { %s191_s29 = scalar_lea.sflag [#allocation3], %s1162_s5  ;;  %s876_s17 = scalar_lea.hbm %s1230_s9, 128 }
  0x41   : > { %p877_p12 = scmp.ne.s32.totalorder %s1230_s9, %s876_s17  ;;  %s881_s26 = scalar_lea.hbm %s1414_s0, 256 }
  0x42   : > { %p882_p10 = scmp.lt.u32.totalorder %s1230_s9, %s1414_s0  ;;  %p883_p13 = scmp.lt.u32.totalorder %s881_s26, %s876_s17 }
  0x43   : > { %p879_p4 = pnand %p877_p12, %p1190_p2  ;;  %p885_p3 = scmp.lt.u32.totalorder %s876_s17, %s1230_s9 }
  0x44   : > { %p884_p1 = por %p883_p13, %p882_p10 }
  0x45   : > { %p880_p7 = pneg %p879_p4 }
  0x46   : > { %p886_p5 = por %p885_p3, %p884_p1 }
  0x48   : > { %p887_p6 = pnand %p886_p5, %p880_p7 }
  0x4a   : > { %890 = shalt.err (!%p887_p6)
}
  0x4b   : > { %s891_s1 = scalar_lea.vmem %s1234_s14, 128  ;;  %s1061_s24 = smov [#allocation2]  }
  0x4c   : > { %p892_p8 = scmp.ne.s32.totalorder %s1234_s14, %s891_s1  ;;  %s896_s12 = sshll.u32 %s1061_s24, 4  ;;  %s897_s12 = int_to_ptr.vmem [resolvable:$false] %s896_s12 }
  0x4d   : > { %s898_s6 = scalar_lea.vmem %s897_s12, 256  ;;  %p899_p4 = scmp.lt.s32.totalorder %s1234_s14, %s897_s12 }
  0x4e   : > { %p894_p9 = pnand %p892_p8, %p1190_p2  ;;  %p900_p11 = scmp.lt.s32.totalorder %s898_s6, %s891_s1 }
  0x50   : > { %p895_p12 = pneg %p894_p9  ;;  %p901_p10 = por %p900_p11, %p899_p4 }
  0x52   : > { %p902_p13 = pnand %p901_p10, %p895_p12 }
  0x54   : > { %905 = shalt.err (!%p902_p13)
}
  0x55   : > { %773 = dma.hbm_to_vmem [thread:$0]  (!%p1168_p0), %s1230_s9, 128, %s1234_s14, %s191_s29  }
  0x56   : > { %s1443_s17 = smul.u32 24, %s1162_s5  ;;  %s906_s7 = scalar_lea.hbm %s1241_s23, 384 }
  0x57   : > { %p907_p11 = scmp.ne.s32.totalorder %s1241_s23, %s906_s7  ;;  %s911_s24 = scalar_lea.hbm %s1416_s2, 768 }
  0x58   : > { %s234_s26 = scalar_lea.vmem [#allocation7], %s1443_s17  ;;  %p912_p3 = scmp.lt.u32.totalorder %s1241_s23, %s1416_s2 }
  0x59   : > { %s241_s10 = sshll.u32 %s234_s26, 4  ;;  %p909_p7 = pnand %p907_p11, %p1190_p2  ;;  %s1267_s10 = int_to_ptr.vmem [resolvable:$true] %s241_s10 }
  0x5a   : > { %p913_p5 = scmp.lt.u32.totalorder %s911_s24, %s906_s7  ;;  %p915_p8 = scmp.lt.u32.totalorder %s906_s7, %s1241_s23 }
  0x5b   : > { %p910_p1 = pneg %p909_p7 }
  0x5c   : > { %p914_p6 = por %p913_p5, %p912_p3 }
  0x5e   : > { %p916_p9 = por %p915_p8, %p914_p6 }
  0x60   : > { %p917_p12 = pnand %p916_p9, %p910_p1 }
  0x62   : > { %920 = shalt.err (!%p917_p12)
}
  0x63   : > { %s921_s29 = scalar_lea.vmem %s1267_s10, 384  ;;  %s1062_s9 = smov [#allocation7]  }
  0x64   : > { %p922_p4 = scmp.ne.s32.totalorder %s1267_s10, %s921_s29  ;;  %s926_s14 = sshll.u32 %s1062_s9, 4  ;;  %s927_s14 = int_to_ptr.vmem [resolvable:$false] %s926_s14 }
  0x65   : > { %s928_s17 = scalar_lea.vmem %s927_s14, 768  ;;  %p929_p11 = scmp.lt.s32.totalorder %s1267_s10, %s927_s14 }
  0x66   : > { %p924_p10 = pnand %p922_p4, %p1190_p2  ;;  %p930_p7 = scmp.lt.s32.totalorder %s928_s17, %s921_s29 }
  0x68   : > { %p925_p13 = pneg %p924_p10  ;;  %p931_p3 = por %p930_p7, %p929_p11 }
  0x6a   : > { %p932_p5 = pnand %p931_p3, %p925_p13 }
  0x6c   : > { %935 = shalt.err (!%p932_p5)
}
  0x6d   : > { %s1444_s26 = smov 8   ;;  %s1445_s7 = smov 128  }
  0x6e   : > { %779 = dma.hbm_to_vmem [thread:$0]  (!%p1168_p0), %s1241_s23, 384, %s1267_s10, %s1184_s22, %s1445_s7, %s1445_s7, %s1444_s26  }
  0x6f   : > { %s1446_s11 = sshll.u32 %s1052_s19, 7  ;;  %s1447_s6 = sshll.u32 %s1162_s5, 3 }
  0x70   : > { %s1299_s12 = scalar_lea.hbm %s1417_s3, %s1446_s11  ;;  %s255_s29 = scalar_lea.vmem [#allocation8], %s1447_s6 }
  0x71   : > { %s262_s9 = sshll.u32 %s255_s29, 4  ;;  %s252_s14 = scalar_lea.sflag [#allocation9], %s1162_s5  ;;  %s263_s9 = int_to_ptr.vmem [resolvable:$true] %s262_s9 }
  0x72   : > { %s936_s17 = scalar_lea.hbm %s1299_s12, 128  ;;  %s941_s10 = scalar_lea.hbm %s1417_s3, 256 }
  0x73   : > { %p937_p1 = scmp.ne.s32.totalorder %s1299_s12, %s936_s17  ;;  %p942_p9 = scmp.lt.u32.totalorder %s1299_s12, %s1417_s3 }
  0x74   : > { %p943_p12 = scmp.lt.u32.totalorder %s941_s10, %s936_s17  ;;  %p945_p10 = scmp.lt.u32.totalorder %s936_s17, %s1299_s12 }
  0x75   : > { %p939_p6 = pnand %p937_p1, %p1190_p2 }
  0x76   : > { %p944_p4 = por %p943_p12, %p942_p9 }
  0x77   : > { %p940_p8 = pneg %p939_p6 }
  0x78   : > { %p946_p13 = por %p945_p10, %p944_p4 }
  0x7a   : > { %p947_p11 = pnand %p946_p13, %p940_p8 }
  0x7c   : > { %950 = shalt.err (!%p947_p11)
}
  0x7d   : > { %s951_s5 = scalar_lea.vmem %s263_s9, 128  ;;  %s1063_s11 = smov [#allocation8]  }
  0x7e   : > { %p952_p7 = scmp.ne.s32.totalorder %s263_s9, %s951_s5  ;;  %s956_s1 = sshll.u32 %s1063_s11, 4  ;;  %s957_s1 = int_to_ptr.vmem [resolvable:$false] %s956_s1 }
  0x7f   : > { %s958_s24 = scalar_lea.vmem %s957_s1, 256  ;;  %p959_p1 = scmp.lt.s32.totalorder %s263_s9, %s957_s1 }
  0x80   : > { %p954_p3 = pnand %p952_p7, %p1190_p2  ;;  %p960_p6 = scmp.lt.s32.totalorder %s958_s24, %s951_s5 }
  0x82   : > { %p955_p5 = pneg %p954_p3  ;;  %p961_p0 = por %p960_p6, %p959_p1 }
  0x84   : > { %p962_p9 = pnand %p961_p0, %p955_p5 }
  0x86   : > { %965 = shalt.err (!%p962_p9)
}
  0x87   : > { %p1448_p12 = scmp.ne.s32.totalorder %s1438_s8, 0  ;;  %p1449_p8 = scmp.ne.s32.totalorder %s1441_s13, 0 }
  0x88   : > { %s1324_s25 = sand.u32 (!%p1449_p8), 1, %s1040_s16   ;;  %p1450_p0 = scmp.ne.s32.totalorder (!%p1449_p8), %s1434_s27, 0 }
  0x89   : > { %782 = dma.hbm_to_vmem [thread:$0]  (!%p1448_p12), %s1299_s12, 128, %s263_s9, %s252_s14  }
  0x8a   : > { %271 = sbr.rel (%p1449_p8) target bundleno = 923 (0x39b), region = 36  ;;  %s1327_s6 = sshll.u32 (!%p1449_p8), %s1324_s25, 3 }
  0x8b   : > { %s274_s29 = scalar_lea.sflag (!%p1449_p8), [#allocation3], %s1324_s25  ;;  %s277_s17 = scalar_lea.vmem (!%p1449_p8), [#allocation2], %s1327_s6 }
  0x91   : > { %1019 = dma.done.wait (%p1450_p0), %s274_s29, 128  }
  0x92   : > { %1021 = vsyncadd (%p1450_p0), %s274_s29, 4294967168  ;;  %s282_s8 = sand.u32 1, %s1124_s21   ;;  %s759_s13 = smul.u32 24, %s1324_s25 }
  0x93   : > { %s283_s12 = scalar_lea.sflag [#allocation6], %s282_s8 }
  0x94   : > { %s286_s9 = scalar_lea.vmem [#allocation5], %s759_s13 }
  0x95   : > { %1023 = dma.done.wait (%p1450_p0), %s283_s12, 768  }
  0x96   : > { %1025 = vsyncadd (%p1450_p0), %s283_s12, 4294966528  ;;  %s1341_s14 = scalar_lea.vmem [#allocation7], %s759_s13  ;;  %s301_s23 = scalar_lea.sflag [#allocation9], %s1324_s25 }
  0x97   : > { %s304_s22 = scalar_lea.vmem [#allocation8], %s1327_s6 }
  0x98   : > { %1027 = dma.done.wait (%p1450_p0), %s301_s23, 128  }
  0x99   : > { %1029 = vsyncadd (%p1450_p0), %s301_s23, 4294967168  ;;  %v1064_v0 = vmov 0.0|0.0   ;;  %vm1065_vm0 = vmmov 0   ;;  %v1066_v1 = vmov 0.0   ;;  %vm364_vm1 = vcmask 261120   ;;  %v348_v2 = vld [vmem:[%s286_s9] sm:$0xff] }
  0x9a   : > { %748 = vmatprep.subr.bf16.mxu0 %v1064_v0  ;;  %736 = vmatprep.mubr.msk.f32.mxu0 %vm1065_vm0, %v1066_v1  ;;  %v349_v3 = vld [vmem:[%s286_s9 + $0x8] sm:$0xff]  ;;  %vm750_vm2 = vmpackc.low %vm364_vm1, %vm364_vm1  ;;  %v345_v5 = vld [vmem:[%s277_s17] sm:$0xff]  ;;  %v356_v8 = vlaneseq  ;;  %vm448_vm6 = vcmask 195584   ;;  %s719_s21 = sshll.u32 %s1048_s18, 7  ;;  %s343_s27 = scalar_lea.vmem [#allocation10], %s1327_s6 }
  0x9b   : > { %752 = vmatprep.subr.bf16.mxu1 %v1064_v0  ;;  %745 = vmatprep.mubr.msk.f32.mxu1 %vm1065_vm0, %v1066_v1  ;;  %v749_v4 = vpack.c.bf16 %v349_v3, %v348_v2  ;;  %v350_v6 = vld [vmem:[%s286_s9 + $0x10] sm:$0xff]  ;;  %v346_v7 = vmul.f32 0.17677669, %v345_v5  ;;  %v353_v24 = vld [vmem:[%s1341_s14 + $0x8] sm:$0xff]  ;;  %v354_v26 = vld [vmem:[%s1341_s14 + $0x10] sm:$0xff]  ;;  %s549_s10 = sshll.u32 %s343_s27, 4  ;;  %s1364_s5 = scalar_lea.hbm %s1418_s4, %s719_s21  ;;  %s1366_s10 = int_to_ptr.vmem [resolvable:$true] %s549_s10 }
  0x9c   : > { %v357_v9 = vshrl.u32 %v356_v8, 7  ;;  %v359_v10 = vand.u32 127, %v356_v8  ;;  %v355_v12 = vld [vmem:[%s304_s22] sm:$0xff]  ;;  %s535_s11 = scalar_lea.sflag [#allocation4], %s1324_s25  ;;  %s966_s1 = scalar_lea.vmem %s1366_s10, 128 }
  0x9d   : > { %751 = vmatpush3.bf16.xpose.msk.msra.mxu0 %vm750_vm2, %v749_v4  ;;  %v352_v23 = vld [vmem:[%s1341_s14] sm:$0xff]  ;;  %p967_p2 = scmp.ne.s32.totalorder %s1366_s10, %s966_s1  ;;  %p1451_p4 = scmp.ne.s32.totalorder %s1435_s28, 0 }
  0x9e   : > { %734 = vmatprep.subr.mxu0 %v1066_v1  ;;  %v361_v11 = vadd.s32 16, %v357_v9  ;;  %vm360_vm3 = vcmp.ge.s32.totalorder %v359_v10, %v357_v9  ;;  %v753_v25 = vpack.c.bf16 %v353_v24, %v352_v23  ;;  %s1067_s18 = smov [#allocation10]  }
  0x9f   : > { %p968_p10 = pnand %p967_p2, %p1451_p4  ;;  %s970_s24 = sshll.u32 %s1067_s18, 4  ;;  %s971_s24 = int_to_ptr.vmem [resolvable:$false] %s970_s24 }
  0xa0   : > { %vm362_vm4 = vcmp.lt.s32.totalorder %v359_v10, %v361_v11  ;;  %754 = vmatpush3.bf16.msra.mxu1 %v753_v25  ;;  %s972_s6 = scalar_lea.vmem %s971_s24, 256  ;;  %p973_p11 = scmp.lt.s32.totalorder %s1366_s10, %s971_s24 }
  0xa1   : > { %vm363_vm5 = vmand %vm360_vm3, %vm362_vm4  ;;  %743 = vmatprep.subr.mxu1 %v1066_v1  ;;  %p969_p13 = pneg %p968_p10  ;;  %p974_p7 = scmp.lt.s32.totalorder %s972_s6, %s966_s1 }
  0xa3   : > { %p975_p3 = por %p974_p7, %p973_p11 }
  0xa4   : > { %744 = vmatpush3.msra.mxu1 %v354_v26 }
  0xa5   : > { %735 = vmatpush3.xpose.msk.msra.mxu0 %vm364_vm1, %v350_v6  ;;  %p976_p5 = pnand %p975_p3, %p969_p13 }
  0xa8   : > { %737 = vmatmul.mubr.msk.f32.vlgmr.msra.gmra.mrb[0].mxu0 %vm364_vm1, %v346_v7 }
 0x17b   : > { %v443_v13 = vpop.f32.mrb[0].mxu0 }
 0x17c   : > { %v444_v14 = vadd.f32 %v443_v13, %v355_v12  ;;  %v738_v15 = vpop.f32.mrb[1].mxu0 }
 0x17e   : > { %v447_v16 = vsel %vm363_vm5, %v444_v14, -1e+30 }
 0x17f   : > { %v449_v17 = vsel %vm448_vm6, %v447_v16, -inf }
 0x180   : > { %450 = vmax.xlane.f32.xlu0 %v449_v17 }
 0x20d   : > { %v451_v18 = vpop.xlane.xlu0 %450 }
 0x20e   : > { %v452_v19 = vsub.f32 %v447_v16, %v451_v18 }
 0x210   : > { %v453_v20 = vmul.f32 1.442695, %v452_v19 }
 0x212   : > { %842 = vpow2.f32 %v453_v20 }
 0x21c   : > { %v843_v21 = vpop.eup %842 }
 0x21d   : > { %v455_v22 = vsel %vm448_vm6, %v843_v21, 0.0 }
 0x21e   : > { %456 = vadd.xlane.f32.xlu0 %v455_v22 }
 0x2ab   : > { %v457_v27 = vpop.xlane.xlu0 %456 }
 0x2ac   : > { %844 = vrcp.f32 %v457_v27 }
 0x2b6   : > { %v845_v28 = vpop.eup %844 }
 0x2b7   : > { %v459_v29 = vmul.f32 %v845_v28, %v843_v21 }
 0x2b9   : > { %746 = vmatmul.mubr.msk.f32.vlgmr.msra.gmra.mrb[0].mxu1 %vm448_vm6, %v459_v29 }
 0x38c   : > { %v529_v30 = vpop.f32.mrb[0].mxu1 }
 0x38d   : > { %533 = vst.msk [vmem:[%s343_s27] sm:$0xff] %vm364_vm1, %v529_v30  ;;  %v747_v31 = vpop.f32.mrb[1].mxu1 }
 0x38e   : > { %979 = shalt.err (!%p976_p5)
}
 0x38f   : > { %s980_s25 = scalar_lea.hbm %s1364_s5, 128  ;;  %s984_s8 = scalar_lea.hbm %s1418_s4, 256 }
 0x390   : > { %p981_p1 = scmp.ne.s32.totalorder %s1364_s5, %s980_s25  ;;  %p985_p12 = scmp.lt.u32.totalorder %s1364_s5, %s1418_s4 }
 0x391   : > { %p986_p8 = scmp.lt.u32.totalorder %s984_s8, %s980_s25  ;;  %p988_p2 = scmp.lt.u32.totalorder %s980_s25, %s1364_s5 }
 0x392   : > { %p982_p6 = pnand %p981_p1, %p1451_p4 }
 0x393   : > { %p987_p0 = por %p986_p8, %p985_p12 }
 0x394   : > { %p983_p9 = pneg %p982_p6 }
 0x395   : > { %p989_p10 = por %p988_p2, %p987_p0 }
 0x397   : > { %p990_p13 = pnand %p989_p10, %p983_p9 }
 0x399   : > { %993 = shalt.err (!%p990_p13)
}
 0x39a   : > { %768 = dma.vmem_to_hbm [thread:$0]  (%p1451_p4), %s1366_s10, 128, %s1364_s5, %s535_s11  }
 0x39b PF: > { %s561_s9 = sand.u32 1, %s1036_s15   ;;  %p1452_p11 = scmp.ne.s32.totalorder %s1437_s30, 0 }
 0x39c   : > { %p1453_p7 = scmp.ge.s32.totalorder %s1056_s20, 2  ;;  %s562_s14 = scalar_lea.sflag [#allocation4], %s561_s9 }
 0x39e   : > { %p784_p3 = pnand %p1453_p7, %p1452_p11 }
 0x3a0   : > { %1031 = dma.done.wait (!%p784_p3), %s562_s14, 128  }
 0x3a1   : > { %1033 = vsyncadd (!%p784_p3), %s562_s14, 4294967168  ;;  %s26_s20 = sadd.s32 1, %s1056_s20   ;;  %s1454_s23 = sld [smem:[#allocation15_spill]] }
 0x3a2   : > { %p23_p5 = scmp.ge.s32.totalorder %s26_s20, 4   ;;  %s1455_s17 = sld [smem:[#allocation17_spill]] }
 0x3a3   : > { %s1456_s28 = sld [smem:[#allocation16_spill]]  ;;  %s1457_s15 = smov %s1040_s16 }
 0x3a4   : > { %s1459_s18 = smov %s1052_s19  ;;  %25 = sbr.rel (!%p23_p5) target bundleno = 12 (0xc), region = 120 }
 0x3a7   : > { %s1458_s16 = smov %s1454_s23 }
 0x3a9   : > { %s1460_s19 = smov %s1456_s28 }
 0x3ab   :  { %567 = vsyncpa [#allocation3], 1 }
 0x3ac   :  { %569 = vsyncpa [#allocation3 + $0x1], 1 }
 0x3ad   :  { %570 = vsyncpa [#allocation6], 1 }
 0x3ae   :  { %572 = vsyncpa [#allocation6 + $0x1], 1 }
 0x3af   :  { %573 = vsyncpa [#allocation9], 1 }
 0x3b0   :  { %575 = vsyncpa [#allocation9 + $0x1], 1 }
 0x3b1   :  { %576 = vsyncpa [#allocation4], 1 }
 0x3b2   :  { %578 = vsyncpa [#allocation4 + $0x1], 1 }

</bundles_post_ra>
